<compile_context>
chip_gen: v7x
topology: tpu7x:2x2x1
jax: 0.10.0
libtpu: 0.0.40
codegen_flags: <defaults>
</compile_context>

<pallas_src>
import functools
import math

import jax
import jax.numpy as jnp
from jax.experimental import pallas as pl
from jax.experimental.pallas import tpu as pltpu

_BN_EPS = 1e-5
_INV_SQRT2 = 0.7071067811865476
_LANE = 128
_ROW_TILE = 16  # bf16 sublane packing -> batch tiles are multiples of 16


def _round_up(n: int, m: int) -> int:
    return (n + m - 1) // m * m


# ---------------------------------------------------------------------------
# Pass 1: first matmul + BatchNorm batch-statistics accumulation + h spill.
# ---------------------------------------------------------------------------
def _stats_kernel(x_ref, wih_t_ref, h_ref, stats_ref):
    """Per batch tile:
        x_ref:      (TB, I)   native-dtype input tile (cast to bf16 in-kernel)
        wih_t_ref:  (I, Hp)   bf16 wih.weight^T (resident, constant index_map)
        h_ref:      (TB, Hp)  bf16 spill of the pre-BN hidden activations
        stats_ref:  (2, Hp)   f32 [sum(h); sum(h^2)] accumulator (resident)
    wih.bias is intentionally dropped: BatchNorm's mean subtraction cancels any
    per-feature constant, and it makes zero-padded batch rows produce h == 0,
    so they do not pollute the raw sums.
    """
    i = pl.program_id(0)

    @pl.when(i == 0)
    def _():
        stats_ref[...] = jnp.zeros_like(stats_ref)

    # In-kernel cast: x read from HBM once in its native dtype.
    h = jnp.dot(x_ref[...].astype(jnp.bfloat16), wih_t_ref[...],
                preferred_element_type=jnp.float32)

    h_ref[...] = h.astype(h_ref.dtype)

    stats_ref[0:1, :] += jnp.sum(h, axis=0, keepdims=True)
    stats_ref[1:2, :] += jnp.sum(h * h, axis=0, keepdims=True)


# ---------------------------------------------------------------------------
# Pass 2: finalize BN stats, apply BN + GELU, second matmul (+ bias).
# ---------------------------------------------------------------------------
def _apply_kernel(h_ref, stats_ref, who_t_ref, bho_ref, gamma_ref, beta_ref,
                  out_ref, *, inv_batch):
    """Per batch tile:
        h_ref:      (TB, Hp)  bf16 hidden activations from pass 1
        stats_ref:  (2, Hp)   f32 raw [sum; sum of squares] over the TRUE batch
        who_t_ref:  (Hp, Op)  bf16 who.weight^T (resident)
        bho_ref:    (1, Op)   f32 who.bias (zero-padded)
        gamma/beta: (1, Hp)   f32 BN affine (zero-padded)
        out_ref:    (TB, Op)  f32 logits (lane-dense; caller slices to (B, O))
    """
    # Tiny (1, Hp) statistics math in f32. Single-pass variance E[h^2]-E[h]^2;
    # adequate at the validated tolerance (mean is bias-free since bih dropped).
    mean = stats_ref[0:1, :] * inv_batch
    ex2 = stats_ref[1:2, :] * inv_batch
    var = jnp.maximum(ex2 - mean * mean, 0.0)          # biased variance
    scale = gamma_ref[...] * jax.lax.rsqrt(var + _BN_EPS)   # gamma folded in
    shift = beta_ref[...] - mean * scale

    # BN apply + exact-erf GELU (torch.nn.GELU default) in f32 (v5e-safe).
    h = h_ref[...].astype(jnp.float32)
    h_bn = h * scale + shift
    g = 0.5 * h_bn * (1.0 + jax.lax.erf(h_bn * _INV_SQRT2))

    out_ref[...] = jnp.dot(g.astype(who_t_ref.dtype), who_t_ref[...],
                           preferred_element_type=jnp.float32) + bho_ref[...]


# ---------------------------------------------------------------------------
# One-time parameter packing (hoisted out of the per-call path).
# ---------------------------------------------------------------------------
def prepare_params(wih, bih, who, bho, gamma, beta):
    """Transpose Linear weights, cast matmul operands to bf16, zero-pad the
    hidden / output feature dims up to a multiple of 128 lanes.
    bih is accepted for API parity but dropped (cancelled by BN mean subtract).
    """
    del bih  # mathematically cancelled by the BatchNorm mean subtraction
    H, I = wih.shape
    O = who.shape[0]
    Hp = _round_up(H, _LANE)
    Op = _round_up(O, _LANE)

    wih_t = jnp.zeros((I, Hp), jnp.bfloat16)
    wih_t = wih_t.at[:, :H].set(
        jnp.asarray(wih, jnp.float32).T.astype(jnp.bfloat16))

    who_t = jnp.zeros((Hp, Op), jnp.bfloat16)
    who_t = who_t.at[:H, :O].set(
        jnp.asarray(who, jnp.float32).T.astype(jnp.bfloat16))

    bho_p = jnp.zeros((1, Op), jnp.float32).at[:, :O].set(
        jnp.asarray(bho, jnp.float32).reshape(1, O))
    gamma_p = jnp.zeros((1, Hp), jnp.float32).at[:, :H].set(
        jnp.asarray(gamma, jnp.float32).reshape(1, H))
    beta_p = jnp.zeros((1, Hp), jnp.float32).at[:, :H].set(
        jnp.asarray(beta, jnp.float32).reshape(1, H))

    return wih_t, who_t, bho_p, gamma_p, beta_p


@functools.partial(jax.jit, static_argnames=("out_features", "batch_tile"))
def mnist_mlp_forward(x, wih_t, who_t, bho_p, gamma_p, beta_p, *,
                      out_features, batch_tile=256):
    """x: (B, inputnodes) in its native dtype. Returns (B, out_features) f32."""
    B, I = x.shape
    Hp = wih_t.shape[1]
    Op = who_t.shape[1]

    tb = min(_round_up(batch_tile, _ROW_TILE), _round_up(B, _ROW_TILE))
    Bp = _round_up(B, tb)
    nb = Bp // tb
    if Bp != B:
        # Zero rows: produce h == 0 (no first-layer bias), so raw sums stay
        # correct; stats divide by the true B below.
        x = jnp.pad(x, ((0, Bp - B), (0, 0)))

    x_bytes = Bp * I * x.dtype.itemsize

    # ---- Pass 1: matmul 1 + stats accumulation + bf16 h spill ----
    h_bf16, stats = pl.pallas_call(
        _stats_kernel,
        grid=(nb,),
        in_specs=[
            pl.BlockSpec((tb, I), lambda i: (i, 0)),
            pl.BlockSpec((I, Hp), lambda i: (0, 0)),     # resident weights
        ],
        out_specs=(
            pl.BlockSpec((tb, Hp), lambda i: (i, 0)),
            pl.BlockSpec((2, Hp), lambda i: (0, 0)),     # resident accumulator
        ),
        out_shape=(
            jax.ShapeDtypeStruct((Bp, Hp), jnp.bfloat16),
            jax.ShapeDtypeStruct((2, Hp), jnp.float32),
        ),
        compiler_params=pltpu.CompilerParams(
            dimension_semantics=("arbitrary",),          # grid-wide reduction
            vmem_limit_bytes=32 * 1024 * 1024),
        cost_estimate=pl.CostEstimate(
            flops=2 * Bp * I * Hp,
            transcendentals=0,
            bytes_accessed=x_bytes + I * Hp * 2 + Bp * Hp * 2 + 2 * Hp * 4),
    )(x, wih_t)

    # ---- Pass 2: BN finalize + GELU + matmul 2 (parallel over batch tiles) ----
    out_padded = pl.pallas_call(
        functools.partial(_apply_kernel, inv_batch=1.0 / B),
        grid=(nb,),
        in_specs=[
            pl.BlockSpec((tb, Hp), lambda i: (i, 0)),
            pl.BlockSpec((2, Hp), lambda i: (0, 0)),
            pl.BlockSpec((Hp, Op), lambda i: (0, 0)),    # resident weights
            pl.BlockSpec((1, Op), lambda i: (0, 0)),
            pl.BlockSpec((1, Hp), lambda i: (0, 0)),
            pl.BlockSpec((1, Hp), lambda i: (0, 0)),
        ],
        out_specs=pl.BlockSpec((tb, Op), lambda i: (i, 0)),
        out_shape=jax.ShapeDtypeStruct((Bp, Op), jnp.float32),
        compiler_params=pltpu.CompilerParams(
            dimension_semantics=("parallel",),           # 2nd TC on v7x
            vmem_limit_bytes=32 * 1024 * 1024),
        cost_estimate=pl.CostEstimate(
            flops=2 * Bp * Hp * Op,
            transcendentals=Bp * Hp,
            bytes_accessed=Bp * Hp * 2 + Hp * Op * 2
                           + (4 * Hp + Op) * 4 + Bp * Op * 4),
    )(h_bf16, stats, who_t, bho_p, gamma_p, beta_p)

    # Slice back to the true batch and class count (cheap XLA op).
    return out_padded[:B, :out_features]


# ---------------------------------------------------------------------------
# References
# ---------------------------------------------------------------------------
def _reference_mirror(x, wih, who, bho, gamma, beta):
    """Pure-JAX reference mirroring the kernel's quantization pipeline
    (bf16 matmul operands, bf16 h spill, bih dropped)."""
    xq = x.astype(jnp.bfloat16).astype(jnp.float32)
    w1q = jnp.asarray(wih, jnp.float32).astype(jnp.bfloat16).astype(jnp.float32)
    w2q = jnp.asarray(who, jnp.float32).astype(jnp.bfloat16).astype(jnp.float32)
    h = xq @ w1q.T
    mean = jnp.mean(h, axis=0, keepdims=True)
    ex2 = jnp.mean(h * h, axis=0, keepdims=True)
    var = jnp.maximum(ex2 - mean * mean, 0.0)
    scale = gamma * jax.lax.rsqrt(var + _BN_EPS)
    hq = h.astype(jnp.bfloat16).astype(jnp.float32)      # mirrors bf16 h spill
    h_bn = (hq - mean) * scale + beta
    g = 0.5 * h_bn * (1.0 + jax.lax.erf(h_bn * _INV_SQRT2))
    gq = g.astype(jnp.bfloat16).astype(jnp.float32)
    return gq @ w2q.T + bho


def _reference_torch_semantics(x, wih, bih, who, bho, gamma, beta):
    """Full-f32 reference of the torch module (bih kept; verifies that dropping
    bih inside the kernel is cancelled by BatchNorm's mean subtraction)."""
    h = x @ wih.T + bih
    mean = jnp.mean(h, axis=0, keepdims=True)
    var = jnp.mean((h - mean) ** 2, axis=0, keepdims=True)
    h_bn = (h - mean) * jax.lax.rsqrt(var + _BN_EPS) * gamma + beta
    g = 0.5 * h_bn * (1.0 + jax.lax.erf(h_bn * _INV_SQRT2))
    return g @ who.T + bho


if __name__ == "__main__":
    # MNIST-MLP-shaped but small. B=24 with batch_tile=16 exercises both the
    # multi-tile grid and the padded-last-tile path of the batch statistics.
    B, I, H, O = 24, 64, 32, 10

    key = jax.random.PRNGKey(0)
    k_x, k_w1, k_b1, k_w2, k_b2, k_g, k_bt = jax.random.split(key, 7)

    # torch.nn.Linear-style init: U[-1/sqrt(fan_in), +1/sqrt(fan_in)].
    b1 = 1.0 / math.sqrt(I)
    b2 = 1.0 / math.sqrt(H)
    wih = jax.random.uniform(k_w1, (H, I), jnp.float32, minval=-b1, maxval=b1)
    bih = jax.random.uniform(k_b1, (H,), jnp.float32, minval=-b1, maxval=b1)
    who = jax.random.uniform(k_w2, (O, H), jnp.float32, minval=-b2, maxval=b2)
    bho = jax.random.uniform(k_b2, (O,), jnp.float32, minval=-b2, maxval=b2)
    # Non-trivial BN affine to exercise the folded-scale path.
    gamma = 1.0 + 0.1 * jax.random.normal(k_g, (H,), jnp.float32)
    beta = 0.1 * jax.random.normal(k_bt, (H,), jnp.float32)

    x = jax.random.normal(k_x, (B, I), jnp.float32)

    # One-time packing (transpose / pad / bf16) hoisted out of the call path.
    wih_t, who_t, bho_p, gamma_p, beta_p = prepare_params(
        wih, bih, who, bho, gamma, beta)

    y = mnist_mlp_forward(x, wih_t, who_t, bho_p, gamma_p, beta_p,
                          out_features=O, batch_tile=16)
    y = jax.block_until_ready(y)

    y_mirror = _reference_mirror(x, wih, who, bho, gamma, beta)
    y_torch = _reference_torch_semantics(x, wih, bih, who, bho, gamma, beta)

    assert y.shape == (B, O)
    assert jnp.allclose(y, y_mirror, atol=5e-3, rtol=5e-3), \
        "mismatch vs quantization-mirroring reference"
    assert jnp.allclose(y, y_torch, atol=5e-2, rtol=5e-2), \
        "mismatch vs full-f32 torch-semantics reference"

    # TODO(synk): BatchNorm1d running_mean/running_var buffer updates (training
    # side effect) are not materialized; note that because wih.bias is dropped
    # in-kernel, any running_mean derived from this kernel would be offset by
    # bih and eval-mode BN would need the bias reinstated.
    print("KERNEL_OK")
</pallas_src>

<mosaic_0001>
module attributes {stable_mosaic.version = 11 : i64} {
  func.func @_apply_kernel(%arg0: i32, %arg1: memref<16x128xbf16, #tpu.memory_space<vmem>>, %arg2: memref<2x128xf32, #tpu.memory_space<vmem>>, %arg3: memref<128x128xbf16, #tpu.memory_space<vmem>>, %arg4: memref<1x128xf32, #tpu.memory_space<vmem>>, %arg5: memref<1x128xf32, #tpu.memory_space<vmem>>, %arg6: memref<1x128xf32, #tpu.memory_space<vmem>>, %arg7: memref<16x128xf32, #tpu.memory_space<vmem>>) attributes {dimension_semantics = [#tpu.dimension_semantics<parallel>], iteration_bounds = array<i64: 2>, scalar_prefetch = 0 : i64, scratch_operands = 0 : i64, tpu.core_type = #tpu.core_type<tc>, window_params = [{transform_indices = @transform_0, window_bounds = array<i64: 16, 128>}, {pipeline_mode = #tpu.pipeline_mode<synchronous>, transform_indices = @transform_1, window_bounds = array<i64: 2, 128>}, {pipeline_mode = #tpu.pipeline_mode<synchronous>, transform_indices = @transform_2, window_bounds = array<i64: 128, 128>}, {pipeline_mode = #tpu.pipeline_mode<synchronous>, transform_indices = @transform_3, window_bounds = array<i64: 1, 128>}, {pipeline_mode = #tpu.pipeline_mode<synchronous>, transform_indices = @transform_4, window_bounds = array<i64: 1, 128>}, {pipeline_mode = #tpu.pipeline_mode<synchronous>, transform_indices = @transform_5, window_bounds = array<i64: 1, 128>}, {transform_indices = @transform_6, window_bounds = array<i64: 16, 128>}]} {
    %c0 = arith.constant 0 : index
    %c0_0 = arith.constant 0 : index
    %0 = vector.load %arg2[%c0, %c0_0] : memref<2x128xf32, #tpu.memory_space<vmem>>, vector<1x128xf32>
    %cst = arith.constant 0.0416666679 : f32
    %1 = vector.broadcast %cst : f32 to vector<1x128xf32>
    %2 = arith.mulf %0, %1 : vector<1x128xf32>
    %c1 = arith.constant 1 : index
    %c0_1 = arith.constant 0 : index
    %3 = vector.load %arg2[%c1, %c0_1] : memref<2x128xf32, #tpu.memory_space<vmem>>, vector<1x128xf32>
    %cst_2 = arith.constant 0.0416666679 : f32
    %4 = vector.broadcast %cst_2 : f32 to vector<1x128xf32>
    %5 = arith.mulf %3, %4 : vector<1x128xf32>
    %6 = arith.mulf %2, %2 : vector<1x128xf32>
    %7 = arith.subf %5, %6 : vector<1x128xf32>
    %cst_3 = arith.constant 0.000000e+00 : f32
    %8 = vector.broadcast %cst_3 : f32 to vector<1x128xf32>
    %9 = arith.maximumf %7, %8 : vector<1x128xf32>
    %c0_4 = arith.constant 0 : index
    %c0_5 = arith.constant 0 : index
    %10 = vector.load %arg5[%c0_4, %c0_5] : memref<1x128xf32, #tpu.memory_space<vmem>>, vector<1x128xf32>
    %cst_6 = arith.constant 9.99999974E-6 : f32
    %11 = vector.broadcast %cst_6 : f32 to vector<1x128xf32>
    %12 = arith.addf %9, %11 : vector<1x128xf32>
    %13 = math.rsqrt %12 : vector<1x128xf32>
    %14 = arith.mulf %10, %13 : vector<1x128xf32>
    %c0_7 = arith.constant 0 : index
    %c0_8 = arith.constant 0 : index
    %15 = vector.load %arg6[%c0_7, %c0_8] : memref<1x128xf32, #tpu.memory_space<vmem>>, vector<1x128xf32>
    %16 = arith.mulf %2, %14 : vector<1x128xf32>
    %17 = arith.subf %15, %16 : vector<1x128xf32>
    %c0_9 = arith.constant 0 : index
    %c0_10 = arith.constant 0 : index
    %18 = vector.load %arg1[%c0_9, %c0_10] : memref<16x128xbf16, #tpu.memory_space<vmem>>, vector<16x128xbf16>
    %19 = arith.extf %18 : vector<16x128xbf16> to vector<16x128xf32>
    %20 = vector.broadcast %14 : vector<1x128xf32> to vector<16x128xf32>
    %21 = arith.mulf %19, %20 : vector<16x128xf32>
    %22 = vector.broadcast %17 : vector<1x128xf32> to vector<16x128xf32>
    %23 = arith.addf %21, %22 : vector<16x128xf32>
    %cst_11 = arith.constant 5.000000e-01 : f32
    %24 = vector.broadcast %cst_11 : f32 to vector<16x128xf32>
    %25 = arith.mulf %24, %23 : vector<16x128xf32>
    %cst_12 = arith.constant 0.707106769 : f32
    %26 = vector.broadcast %cst_12 : f32 to vector<16x128xf32>
    %27 = arith.mulf %23, %26 : vector<16x128xf32>
    %28 = math.erf %27 : vector<16x128xf32>
    %cst_13 = arith.constant 1.000000e+00 : f32
    %29 = vector.broadcast %cst_13 : f32 to vector<16x128xf32>
    %30 = arith.addf %29, %28 : vector<16x128xf32>
    %31 = arith.mulf %25, %30 : vector<16x128xf32>
    %32 = arith.truncf %31 : vector<16x128xf32> to vector<16x128xbf16>
    %c0_14 = arith.constant 0 : index
    %c0_15 = arith.constant 0 : index
    %33 = vector.load %arg3[%c0_14, %c0_15] : memref<128x128xbf16, #tpu.memory_space<vmem>>, vector<128x128xbf16>
    %cst_16 = arith.constant dense<0.000000e+00> : vector<16x128xf32>
    %34 = tpu.matmul %32, %33, %cst_16 {dimension_numbers = #tpu.dot_dimension_numbers<[1], [0], [0], [1], [0, 0, 1, 1], [], []>} : vector<16x128xbf16>, vector<128x128xbf16>, vector<16x128xf32> -> vector<16x128xf32>
    %c0_17 = arith.constant 0 : index
    %c0_18 = arith.constant 0 : index
    %35 = vector.load %arg4[%c0_17, %c0_18] : memref<1x128xf32, #tpu.memory_space<vmem>>, vector<1x128xf32>
    %36 = vector.broadcast %35 : vector<1x128xf32> to vector<16x128xf32>
    %37 = arith.addf %34, %36 : vector<16x128xf32>
    %c0_19 = arith.constant 0 : index
    %c0_20 = arith.constant 0 : index
    %38 = vector.load %arg7[%c0_19, %c0_20] : memref<16x128xf32, #tpu.memory_space<vmem>>, vector<16x128xf32>
    tpu.vector_store %arg7[%c0_19, %c0_20], %37 {strides = array<i32>} : memref<16x128xf32, #tpu.memory_space<vmem>>, vector<16x128xf32>,
    return
  }
  func.func @transform_0(%arg0: i32) -> (i32, i32) {
    %c0_i32 = arith.constant 0 : i32
    %c0_i32_0 = arith.constant 0 : i32
    return %arg0, %c0_i32 : i32, i32
  }
  func.func @transform_1(%arg0: i32) -> (i32, i32) {
    %c0_i32 = arith.constant 0 : i32
    %c0_i32_0 = arith.constant 0 : i32
    %c0_i32_1 = arith.constant 0 : i32
    return %c0_i32, %c0_i32_0 : i32, i32
  }
  func.func @transform_2(%arg0: i32) -> (i32, i32) {
    %c0_i32 = arith.constant 0 : i32
    %c0_i32_0 = arith.constant 0 : i32
    %c0_i32_1 = arith.constant 0 : i32
    return %c0_i32, %c0_i32_0 : i32, i32
  }
  func.func @transform_3(%arg0: i32) -> (i32, i32) {
    %c0_i32 = arith.constant 0 : i32
    %c0_i32_0 = arith.constant 0 : i32
    %c0_i32_1 = arith.constant 0 : i32
    return %c0_i32, %c0_i32_0 : i32, i32
  }
  func.func @transform_4(%arg0: i32) -> (i32, i32) {
    %c0_i32 = arith.constant 0 : i32
    %c0_i32_0 = arith.constant 0 : i32
    %c0_i32_1 = arith.constant 0 : i32
    return %c0_i32, %c0_i32_0 : i32, i32
  }
  func.func @transform_5(%arg0: i32) -> (i32, i32) {
    %c0_i32 = arith.constant 0 : i32
    %c0_i32_0 = arith.constant 0 : i32
    %c0_i32_1 = arith.constant 0 : i32
    return %c0_i32, %c0_i32_0 : i32, i32
  }
  func.func @transform_6(%arg0: i32) -> (i32, i32) {
    %c0_i32 = arith.constant 0 : i32
    %c0_i32_0 = arith.constant 0 : i32
    return %arg0, %c0_i32 : i32, i32
  }
}

module attributes {stable_mosaic.version = 11 : i64} {
  func.func @_stats_kernel(%arg0: i32, %arg1: memref<16x64xf32, #tpu.memory_space<vmem>>, %arg2: memref<64x128xbf16, #tpu.memory_space<vmem>>, %arg3: memref<16x128xbf16, #tpu.memory_space<vmem>>, %arg4: memref<2x128xf32, #tpu.memory_space<vmem>>) attributes {dimension_semantics = [#tpu.dimension_semantics<arbitrary>], iteration_bounds = array<i64: 2>, scalar_prefetch = 0 : i64, scratch_operands = 0 : i64, tpu.core_type = #tpu.core_type<tc>, window_params = [{transform_indices = @transform_0, window_bounds = array<i64: 16, 64>}, {pipeline_mode = #tpu.pipeline_mode<synchronous>, transform_indices = @transform_1, window_bounds = array<i64: 64, 128>}, {transform_indices = @transform_2, window_bounds = array<i64: 16, 128>}, {pipeline_mode = #tpu.pipeline_mode<synchronous>, transform_indices = @transform_3, window_bounds = array<i64: 2, 128>}]} {
    %c0_i32 = arith.constant 0 : i32
    %0 = arith.cmpi eq, %arg0, %c0_i32 : i32
    %1 = arith.extui %0 : i1 to i32
    %c0_i32_0 = arith.constant 0 : i32
    %2 = arith.cmpi ne, %1, %c0_i32_0 : i32
    scf.if %2 {
      %cst_15 = arith.constant 0.000000e+00 : f32
      %20 = vector.broadcast %cst_15 : f32 to vector<2x128xf32>
      %c0_16 = arith.constant 0 : index
      %c0_17 = arith.constant 0 : index
      %21 = vector.load %arg4[%c0_16, %c0_17] : memref<2x128xf32, #tpu.memory_space<vmem>>, vector<2x128xf32>
      tpu.vector_store %arg4[%c0_16, %c0_17], %20 {strides = array<i32>} : memref<2x128xf32, #tpu.memory_space<vmem>>, vector<2x128xf32>,
    } else {
    }
    %c0 = arith.constant 0 : index
    %c0_1 = arith.constant 0 : index
    %3 = vector.load %arg1[%c0, %c0_1] : memref<16x64xf32, #tpu.memory_space<vmem>>, vector<16x64xf32>
    %4 = arith.truncf %3 : vector<16x64xf32> to vector<16x64xbf16>
    %c0_2 = arith.constant 0 : index
    %c0_3 = arith.constant 0 : index
    %5 = vector.load %arg2[%c0_2, %c0_3] : memref<64x128xbf16, #tpu.memory_space<vmem>>, vector<64x128xbf16>
    %cst = arith.constant dense<0.000000e+00> : vector<16x128xf32>
    %6 = tpu.matmul %4, %5, %cst {dimension_numbers = #tpu.dot_dimension_numbers<[1], [0], [0], [1], [0, 0, 1, 1], [], []>} : vector<16x64xbf16>, vector<64x128xbf16>, vector<16x128xf32> -> vector<16x128xf32>
    %7 = arith.truncf %6 : vector<16x128xf32> to vector<16x128xbf16>
    %c0_4 = arith.constant 0 : index
    %c0_5 = arith.constant 0 : index
    %8 = vector.load %arg3[%c0_4, %c0_5] : memref<16x128xbf16, #tpu.memory_space<vmem>>, vector<16x128xbf16>
    tpu.vector_store %arg3[%c0_4, %c0_5], %7 {strides = array<i32>} : memref<16x128xbf16, #tpu.memory_space<vmem>>, vector<16x128xbf16>,
    %c0_6 = arith.constant 0 : index
    %c0_7 = arith.constant 0 : index
    %9 = vector.load %arg4[%c0_6, %c0_7] : memref<2x128xf32, #tpu.memory_space<vmem>>, vector<1x128xf32>
    %cst_8 = arith.constant dense<0.000000e+00> : vector<128xf32>
    %10 = vector.multi_reduction <add>, %6, %cst_8 [0] : vector<16x128xf32> to vector<128xf32>
    %11 = vector.shape_cast %10 : vector<128xf32> to vector<1x128xf32>
    %12 = arith.addf %9, %11 : vector<1x128xf32>
    %c0_9 = arith.constant 0 : index
    %c0_10 = arith.constant 0 : index
    %13 = vector.load %arg4[%c0_9, %c0_10] : memref<2x128xf32, #tpu.memory_space<vmem>>, vector<1x128xf32>
    tpu.vector_store %arg4[%c0_9, %c0_10], %12 {strides = array<i32>} : memref<2x128xf32, #tpu.memory_space<vmem>>, vector<1x128xf32>,
    %c1 = arith.constant 1 : index
    %c0_11 = arith.constant 0 : index
    %14 = vector.load %arg4[%c1, %c0_11] : memref<2x128xf32, #tpu.memory_space<vmem>>, vector<1x128xf32>
    %15 = arith.mulf %6, %6 : vector<16x128xf32>
    %cst_12 = arith.constant dense<0.000000e+00> : vector<128xf32>
    %16 = vector.multi_reduction <add>, %15, %cst_12 [0] : vector<16x128xf32> to vector<128xf32>
    %17 = vector.shape_cast %16 : vector<128xf32> to vector<1x128xf32>
    %18 = arith.addf %14, %17 : vector<1x128xf32>
    %c1_13 = arith.constant 1 : index
    %c0_14 = arith.constant 0 : index
    %19 = vector.load %arg4[%c1_13, %c0_14] : memref<2x128xf32, #tpu.memory_space<vmem>>, vector<1x128xf32>
    tpu.vector_store %arg4[%c1_13, %c0_14], %18 {strides = array<i32>} : memref<2x128xf32, #tpu.memory_space<vmem>>, vector<1x128xf32>,
    return
  }
  func.func @transform_0(%arg0: i32) -> (i32, i32) {
    %c0_i32 = arith.constant 0 : i32
    %c0_i32_0 = arith.constant 0 : i32
    return %arg0, %c0_i32 : i32, i32
  }
  func.func @transform_1(%arg0: i32) -> (i32, i32) {
    %c0_i32 = arith.constant 0 : i32
    %c0_i32_0 = arith.constant 0 : i32
    %c0_i32_1 = arith.constant 0 : i32
    return %c0_i32, %c0_i32_0 : i32, i32
  }
  func.func @transform_2(%arg0: i32) -> (i32, i32) {
    %c0_i32 = arith.constant 0 : i32
    %c0_i32_0 = arith.constant 0 : i32
    return %arg0, %c0_i32 : i32, i32
  }
  func.func @transform_3(%arg0: i32) -> (i32, i32) {
    %c0_i32 = arith.constant 0 : i32
    %c0_i32_0 = arith.constant 0 : i32
    %c0_i32_1 = arith.constant 0 : i32
    return %c0_i32, %c0_i32_0 : i32, i32
  }
}

</mosaic_0001>

<bundles_post_ra>
// kernel: mnist_mlp_forward.3
= control target key start
LH: loop header
LB: loop body
LE: loop exit
PB: predicated region body
PF: predicated region fallthrough
CT: control target
= control target key end

     0   :  { %s593_s21 = smov 0   ;;  %s653_s0 = inlined_call_operand.vmem [shape: bf16[32,128], index: 0, kind: input, shape index: {}]   ;;  %s654_s1 = inlined_call_operand.vmem [shape: f32[2,128], index: 1, kind: input, shape index: {}]   ;;  %s655_s2 = inlined_call_operand.vmem [shape: bf16[128,128], index: 2, kind: input, shape index: {}]   ;;  %s656_s3 = inlined_call_operand.vmem [shape: f32[1,128], index: 3, kind: input, shape index: {}]   ;;  %s657_s4 = inlined_call_operand.vmem [shape: f32[1,128], index: 4, kind: input, shape index: {}]   ;;  %s658_s5 = inlined_call_operand.vmem [shape: f32[1,128], index: 5, kind: input, shape index: {}]   ;;  %s659_s6 = inlined_call_operand.vmem [shape: f32[32,128], index: 6, kind: output, shape index: {}]  }
   0x1 LB: > { %s471_s22 = sadd.s32 4294967295, %s554_s21   ;;  %p475_p0 = scmp.ge.s32.totalorder %s554_s21, 1  ;;  %s554_s21 = sphi %s593_s21, %s16_s21  }
   0x2   : > { %p213_p1 = scmp.lt.s32.totalorder %s554_s21, 3 }
   0x4   : > { %p214_p2 = pnand %p475_p0, %p213_p1 }
   0x5   : > { %v534_v0 = vld [vmem:[%s655_s2] sm:$0xff] (!%p214_p2)   ;;  %v556_v1 = vmov (!%p214_p2), 0.0   ;;  %v535_v2 = vld [vmem:[%s655_s2 + $0x8] sm:$0xff] (!%p214_p2)   ;;  %vm557_vm0 = vmmov (!%p214_p2), 0   ;;  %v536_v3 = vld [vmem:[%s655_s2 + $0x10] sm:$0xff] (!%p214_p2)   ;;  %s476_s11 = sshll.u32 (!%p214_p2), %s471_s22, 1  ;;  %v275_v15 = vlaneseq (!%p214_p2) }
   0x6   : > { %217 = sbr.rel (%p214_p2) target bundleno = 275 (0x113), region = 44  ;;  %504 = vmatprep.subr.bf16.mxu0 (!%p214_p2), %v556_v1  ;;  %520 = vmatprep.mubr.msk.bf16.mxu0 (!%p214_p2), %vm557_vm0, %v556_v1  ;;  %v256_v4 = vld [vmem:[%s654_s1] sm:$0x1] (!%p214_p2)  ;;  %v258_v5 = vld [vmem:[%s654_s1 + $0x1] sm:$0x1] (!%p214_p2)  ;;  %v537_v8 = vld [vmem:[%s655_s2 + $0x18] sm:$0xff] (!%p214_p2)  }
   0x7   : > { %505 = vmatpush3.bf16.msra.mxu0 (!%p214_p2), %v534_v0  ;;  %v257_v6 = vmul.f32 (!%p214_p2), 0.041666668, %v256_v4  ;;  %v259_v7 = vmul.f32 (!%p214_p2), 0.041666668, %v258_v5  ;;  %p244_p3 = scmp.lt.s32.totalorder (!%p214_p2), %s476_s11, 3  ;;  %v538_v11 = vld [vmem:[%s655_s2 + $0x20] sm:$0xff] (!%p214_p2)  }
   0x8   : > { %506 = vmatprep.subr.bf16.mxu0 (!%p214_p2), %v556_v1  ;;  %v539_v14 = vld [vmem:[%s655_s2 + $0x28] sm:$0xff] (!%p214_p2)   ;;  %v540_v16 = vld [vmem:[%s655_s2 + $0x30] sm:$0xff] (!%p214_p2)   ;;  %v276_v17 = vshrl.u32 (!%p214_p2), %v275_v15, 7  ;;  %v541_v18 = vld [vmem:[%s655_s2 + $0x38] sm:$0xff] (!%p214_p2)  }
   0x9   : > { %v260_v9 = vmul.f32 (!%p214_p2), %v257_v6, %v257_v6  ;;  %v263_v19 = vld [vmem:[%s657_s4] sm:$0x1] (!%p214_p2) }
   0xa   : > { %v277_v21 = vsub.s32 (!%p214_p2), 0, %v276_v17  ;;  %v267_v26 = vld [vmem:[%s658_s5] sm:$0x1] (!%p214_p2) }
   0xb   : > { %507 = vmatpush3.bf16.msra.mxu0 (!%p214_p2), %v535_v2  ;;  %v261_v10 = vsub.f32 (!%p214_p2), %v259_v7, %v260_v9  ;;  %v480_v46 = vld [vmem:[%s656_s3] ss:$0 sm:$0xff] (!%p214_p2) }
   0xc   : > { %508 = vmatprep.subr.bf16.mxu0 (!%p214_p2), %v556_v1 }
   0xd   : > { %v262_v12 = vmax.f32 %v261_v10, 0.0  ;;  %s661_s11 = smov (!%p244_p3, %s476_s11), 3 }
   0xe   : > { %s477_s16 = sshll.u32 %s661_s11, 2  ;;  %s479_s29 = sshll.u32 %s661_s11, 3 }
   0xf   : > { %509 = vmatpush3.bf16.msra.mxu0 %v536_v3  ;;  %v264_v13 = vadd.f32 1e-05, %v262_v12  ;;  %s247_s22 = scalar_lea.vmem %s653_s0, %s477_s16  ;;  %s253_s10 = scalar_lea.vmem %s659_s6, %s479_s29 }
  0x10   : > { %510 = vmatprep.subr.bf16.mxu0 %v556_v1  ;;  %v492_v20 = vld [vmem:[%s247_s22] sm:$0xff]  }
  0x11   : > { %542 = vrsqrt.f32 %v264_v13  ;;  %v493_v24 = vunpack.c.l.bf16 %v492_v20  ;;  %v494_v25 = vunpack.c.h.bf16 %v492_v20 }
  0x13   : > { %511 = vmatpush3.bf16.msra.mxu0 %v537_v8 }
  0x14   : > { %512 = vmatprep.subr.bf16.mxu0 %v556_v1 }
  0x17   : > { %513 = vmatpush3.bf16.msra.mxu0 %v538_v11 }
  0x18   : > { %514 = vmatprep.subr.bf16.mxu0 %v556_v1 }
  0x1b   : > { %515 = vmatpush3.bf16.msra.mxu0 %v539_v14  ;;  %v543_v22 = vpop.eup %542 }
  0x1c   : > { %516 = vmatprep.subr.bf16.mxu0 %v556_v1  ;;  %v266_v23 = vmul.f32 %v543_v22, %v263_v19 }
  0x1e   : > { %v268_v27 = vmul.f32 %v266_v23, %v257_v6  ;;  %v278_v28 = vrot.slane %v266_v23, %v277_v21 }
  0x1f   : > { %517 = vmatpush3.bf16.msra.mxu0 %v540_v16 }
  0x20   : > { %518 = vmatprep.subr.bf16.mxu0 %v556_v1  ;;  %v269_v29 = vsub.f32 %v267_v26, %v268_v27  ;;  %v280_v30 = vmul.f32 %v493_v24, %v278_v28  ;;  %v281_v31 = vmul.f32 %v494_v25, %v278_v28 }
  0x22   : > { %v286_v32 = vrot.slane %v269_v29, %v277_v21 }
  0x23   : > { %519 = vmatpush3.bf16.msra.mxu0 %v541_v18 }
  0x24   : > { %v288_v33 = vadd.f32 %v286_v32, %v280_v30  ;;  %v289_v34 = vadd.f32 %v286_v32, %v281_v31 }
  0x26   : > { %v292_v35 = vmul.f32 0.70710677, %v288_v33  ;;  %v293_v36 = vmul.f32 0.70710677, %v289_v34  ;;  %v290_v37 = vmul.f32 0.5, %v288_v33  ;;  %v291_v39 = vmul.f32 0.5, %v289_v34 }
  0x28   : > { %544 = verf.f32 %v292_v35 }
  0x29   : > { %546 = verf.f32 %v293_v36 }
  0x32   : > { %v545_v38 = vpop.eup %544 }
  0x33   : > { %v547_v40 = vpop.eup %546  ;;  %v296_v41 = vadd.f32 1.0, %v545_v38 }
  0x34   : > { %v297_v42 = vadd.f32 1.0, %v547_v40 }
  0x35   : > { %v298_v43 = vmul.f32 %v296_v41, %v290_v37 }
  0x36   : > { %v299_v44 = vmul.f32 %v297_v42, %v291_v39 }
  0x38   : > { %v300_v45 = vpack.c.bf16 %v299_v44, %v298_v43 }
  0x3a   : > { %521 = vmatmul.mubr.bf16.vlgmr.msra.gmra.mrb[0].mxu0 %v300_v45 }
 0x10d   : > { %v406_v47 = vpop.f32.mrb[0].mxu0 }
 0x10e   : > { %v407_v48 = vadd.f32 %v480_v46, %v406_v47  ;;  %v522_v49 = vpop.f32.mrb[1].mxu0 }
 0x10f   : > { %v409_v50 = vpop.f32.mrb[2].mxu0 }
 0x110   : > { %413 = vst [vmem:[%s253_s10] sm:$0xff] %v407_v48  ;;  %v410_v51 = vadd.f32 %v480_v46, %v409_v50  ;;  %v523_v52 = vpop.f32.mrb[3].mxu0 }
 0x112   : > { %414 = vst [vmem:[%s253_s10 + $0x8] sm:$0xff] %v410_v51 }
 0x113 PF: > { %s16_s21 = sadd.s32 1, %s554_s21  }
 0x114   : > { %p13_p4 = scmp.ge.s32.totalorder %s16_s21, 4  }
 0x116   :  { %15 = sbr.rel (!%p13_p4) target bundleno = 1 (0x1), region = 74 }

// kernel: mnist_mlp_forward.2
= control target key start
LH: loop header
LB: loop body
LE: loop exit
PB: predicated region body
PF: predicated region fallthrough
CT: control target
= control target key end

     0   :  { %s441_s12 = smov 0   ;;  %s488_s0 = inlined_call_operand.vmem [shape: f32[32,64], index: 0, kind: input, shape index: {}]   ;;  %s489_s1 = inlined_call_operand.vmem [shape: bf16[64,128], index: 1, kind: input, shape index: {}]   ;;  %s490_s2 = inlined_call_operand.vmem [shape: bf16[32,128], index: 2, kind: output, shape index: {0}]   ;;  %s491_s3 = inlined_call_operand.vmem [shape: f32[2,128], index: 3, kind: output, shape index: {1}]  }
   0x1 LB: > { %s352_s13 = sadd.s32 4294967295, %s416_s12   ;;  %p356_p0 = scmp.ge.s32.totalorder %s416_s12, 1  ;;  %s416_s12 = sphi %s441_s12, %s14_s12  }
   0x2   : > { %p136_p1 = scmp.lt.s32.totalorder %s416_s12, 3 }
   0x4   : > { %p137_p2 = pnand %p356_p0, %p136_p1 }
   0x5   : > { %s357_s14 = sshll.u32 (!%p137_p2), %s352_s13, 1  ;;  %p361_p4 = scmp.ne.s32.totalorder (!%p137_p2), %s352_s13, 0 }
   0x6   : > { %140 = sbr.rel (%p137_p2) target bundleno = 270 (0x10e), region = 28  ;;  %p161_p3 = scmp.lt.s32.totalorder (!%p137_p2), %s357_s14, 3 }
   0xd   : > { %s493_s14 = smov (!%p161_p3, %s357_s14), 3  ;;  %176 = sbr.rel (%p361_p4) target bundleno = 20 (0x14), region = 32 }
   0xe   : > { %s358_s15 = sshll.u32 %s493_s14, 3  ;;  %s360_s16 = sshll.u32 %s493_s14, 2  ;;  %v418_v0 = vmov (!%p361_p4), 0.0  }
   0xf   : > { %s164_s19 = scalar_lea.vmem %s488_s0, %s358_s15  ;;  %s455_s22 = scalar_lea.vmem %s490_s2, %s360_s16  ;;  %177 = vst [vmem:[%s491_s3] sm:$0x3] (!%p361_p4), %v418_v0 }
  0x14 PF: > { %v406_v1 = vld [vmem:[%s489_s1] sm:$0xff]   ;;  %v419_v2 = vmov 0.0   ;;  %v407_v3 = vld [vmem:[%s489_s1 + $0x8] sm:$0xff]   ;;  %vm420_vm0 = vmmov 0   ;;  %v408_v4 = vld [vmem:[%s489_s1 + $0x10] sm:$0xff]   ;;  %vm213_vm1 = vcmask 523264  }
  0x15   : > { %383 = vmatprep.subr.bf16.mxu0 %v419_v2  ;;  %391 = vmatprep.mubr.msk.bf16.mxu0 %vm420_vm0, %v419_v2  ;;  %v409_v5 = vld [vmem:[%s489_s1 + $0x18] sm:$0xff]   ;;  %v178_v6 = vld [vmem:[%s164_s19] sm:$0xff]  ;;  %v179_v7 = vld [vmem:[%s164_s19 + $0x8] sm:$0xff] }
  0x16   : > { %384 = vmatpush3.bf16.msra.mxu0 %v406_v1  ;;  %v180_v8 = vpack.c.bf16 %v179_v7, %v178_v6  ;;  %v268_v27 = vld [vmem:[%s491_s3] sm:$0x1]  ;;  %v278_v30 = vld [vmem:[%s491_s3 + $0x1] sm:$0x1] }
  0x17   : > { %385 = vmatprep.subr.bf16.mxu0 %v419_v2 }
  0x1a   : > { %386 = vmatpush3.bf16.msra.mxu0 %v407_v3 }
  0x1b   : > { %387 = vmatprep.subr.bf16.mxu0 %v419_v2 }
  0x1e   : > { %388 = vmatpush3.bf16.msra.mxu0 %v408_v4 }
  0x1f   : > { %389 = vmatprep.subr.bf16.mxu0 %v419_v2 }
  0x22   : > { %390 = vmatpush3.bf16.msra.mxu0 %v409_v5 }
  0x25   : > { %392 = vmatmul.mubr.msk.bf16.vlgmr.msra.gmra.mrb[0].mxu0 %vm213_vm1, %v180_v8 }
  0xf8   : > { %v251_v9 = vpop.f32.mrb[0].mxu0 }
  0xf9   : > { %v393_v10 = vpop.f32.mrb[1].mxu0  ;;  %v279_v12 = vmul.f32 %v251_v9, %v251_v9 }
  0xfa   : > { %v254_v11 = vpop.f32.mrb[2].mxu0 }
  0xfb   : > { %v376_v13 = vpack.c.bf16 %v254_v11, %v251_v9  ;;  %v269_v14 = vadd.f32 %v254_v11, %v251_v9  ;;  %v280_v15 = vmul.f32 %v254_v11, %v254_v11  ;;  %v394_v16 = vpop.f32.mrb[3].mxu0 }
  0xfd   : > { %377 = vst [vmem:[%s455_s22] sm:$0xff] %v376_v13   ;;  %v270_v17 = vrot.slane %v269_v14, 4  ;;  %v281_v18 = vadd.f32 %v280_v15, %v279_v12 }
  0xff   : > { %v271_v19 = vadd.f32 %v270_v17, %v269_v14  ;;  %v282_v20 = vrot.slane %v281_v18, 4 }
 0x101   : > { %v272_v21 = vrot.slane %v271_v19, 2  ;;  %v283_v22 = vadd.f32 %v282_v20, %v281_v18 }
 0x103   : > { %v273_v23 = vadd.f32 %v272_v21, %v271_v19  ;;  %v284_v24 = vrot.slane %v283_v22, 2 }
 0x105   : > { %v274_v25 = vrot.slane %v273_v23, 1  ;;  %v285_v26 = vadd.f32 %v284_v24, %v283_v22 }
 0x107   : > { %v275_v28 = vadd.f32 %v274_v25, %v273_v23  ;;  %v286_v29 = vrot.slane %v285_v26, 1 }
 0x109   : > { %v276_v31 = vadd.f32 %v275_v28, %v268_v27  ;;  %v287_v32 = vadd.f32 %v286_v29, %v285_v26 }
 0x10b   : > { %277 = vst [vmem:[%s491_s3] sm:$0x1] %v276_v31  ;;  %v288_v33 = vadd.f32 %v287_v32, %v278_v30 }
 0x10d   : > { %289 = vst [vmem:[%s491_s3 + $0x1] sm:$0x1] %v288_v33 }
 0x10e PF: > { %s14_s12 = sadd.s32 1, %s416_s12  }
 0x10f   : > { %p11_p5 = scmp.ge.s32.totalorder %s14_s12, 4  }
 0x111   :  { %13 = sbr.rel (!%p11_p5) target bundleno = 1 (0x1), region = 70 }

</bundles_post_ra>
